<compile_context>
chip_gen: v5e
topology: v5e:2x2
jax: 0.10.0
libtpu: 0.0.40
codegen_flags: <defaults>
</compile_context>

<pallas_src>
import jax
import jax.numpy as jnp
from jax.experimental import pallas as pl
from jax.experimental.pallas import tpu as pltpu


def _lora_kernel(x_ref, w_ref, bias_ref, o_ref):
    # x_ref:    (tm, D_in)    tile of flattened input rows (compute_dtype)
    # w_ref:    (D_in, D_out) fused weight = scaling * (lora_A^T @ lora_B^T), loop-invariant
    # bias_ref: (1, D_out)    pre-scaled bias (f32)
    # o_ref:    (tm, D_out)
    acc = jnp.dot(x_ref[...], w_ref[...], preferred_element_type=jnp.float32)
    o_ref[...] = (acc + bias_ref[...]).astype(o_ref.dtype)


def _derive_row_tile(M, D_in, D_out, x_bytes, out_bytes, tm):
    """Pick a balanced row tile (multiple of 16) capped by a conservative VMEM budget."""
    tm = max(16, (tm // 16) * 16)
    # Double-buffered x + out tiles must fit comfortably under the smallest scoped
    # VMEM default (16 MiB on v5e); 12 MiB budget leaves headroom on v5e/v6e/v7x.
    vmem_tile_budget = 12 * 1024 * 1024
    per_row = 2 * (D_in * x_bytes + D_out * out_bytes)  # double-buffered in + out
    tm_cap = max(16, (vmem_tile_budget // per_row) // 16 * 16)
    tm = min(tm, tm_cap)
    # Balance tiles so an M just over a tile multiple doesn't run a ~100%-padding tail.
    n_blk = pl.cdiv(M, tm)
    tm_eff = max(16, min(tm, ((pl.cdiv(M, n_blk) + 15) // 16) * 16))
    return tm_eff, pl.cdiv(M, tm_eff)


def lora_linear(x, lora_A, lora_B, bias, scaling, *, tm=2048,
                compute_dtype=jnp.bfloat16):
    """x: (B, N, D_in) -> (B, N, D_out).  lora_A: (r, D_in), lora_B: (D_out, r), bias: (D_out,)."""
    B, N, D_in = x.shape
    D_out, r = lora_B.shape
    M = B * N
    out_dtype = x.dtype

    scal = jnp.asarray(scaling, jnp.float32)
    # Fused, pre-scaled weight: one clean K=D_in MXU contraction instead of two
    # rank-r passes with a (tm, r) lane-sparse intermediate.  Computed once in f32.
    w = (jnp.dot(lora_A.astype(jnp.float32).T, lora_B.astype(jnp.float32).T)
         * scal).astype(compute_dtype)                       # (D_in, D_out)
    bias_s = (bias.astype(jnp.float32) * scal).reshape(1, D_out)  # (1, D_out), f32

    x2 = x.reshape(M, D_in)
    if x2.dtype != compute_dtype:
        # TODO(synk): pass x already in compute_dtype upstream to avoid this extra HBM pass.
        x2 = x2.astype(compute_dtype)

    x_bytes = jnp.dtype(compute_dtype).itemsize
    out_bytes = jnp.dtype(out_dtype).itemsize
    tm_eff, n_blk = _derive_row_tile(M, D_in, D_out, x_bytes, out_bytes, tm)

    out2 = pl.pallas_call(
        _lora_kernel,
        out_shape=jax.ShapeDtypeStruct((M, D_out), out_dtype),
        grid_spec=pltpu.PrefetchScalarGridSpec(
            num_scalar_prefetch=0,
            grid=(n_blk,),
            in_specs=[
                pl.BlockSpec((tm_eff, D_in), lambda i: (i, 0)),   # x row tile
                pl.BlockSpec((D_in, D_out), lambda i: (0, 0)),    # fused W (loop-invariant)
                pl.BlockSpec((1, D_out), lambda i: (0, 0)),       # scaled bias
            ],
            out_specs=pl.BlockSpec((tm_eff, D_out), lambda i: (i, 0)),
        ),
        compiler_params=pltpu.CompilerParams(
            dimension_semantics=("parallel",),        # shard row grid across v7x's 2 TCs
            vmem_limit_bytes=32 * 1024 * 1024,
        ),
    )(x2, w, bias_s)

    return out2.reshape(B, N, D_out)


def _reference(x, lora_A, lora_B, bias, scaling):
    # Exact PyTorch factored-form semantics, in f32.
    ref = jnp.einsum("bnp,rp->bnr", x, lora_A * scaling)
    ref = jnp.einsum("bnr,pr->bnp", ref, lora_B)
    return ref + bias * scaling


if __name__ == "__main__":
    # Module config: input_dim=128, output_dim=128, rank=8, lora_alpha=16.0
    # -> scaling = lora_alpha / rank = 2.0 (lora_alpha > 1.5), bias=True.
    in_features, out_features, rank = 128, 128, 8
    lora_alpha = 16.0
    scaling = lora_alpha / rank

    key = jax.random.PRNGKey(0)
    kx, ka, kb, kbias, kx2, kx3 = jax.random.split(key, 6)

    # TODO(synk): the module's 'He_s' init zeros lora_B and b (output identically zero);
    # small deterministic random values are used so the compute path is exercised.
    lora_A = jax.random.normal(ka, (rank, in_features), dtype=jnp.float32) * 0.02
    lora_B = jax.random.normal(kb, (out_features, rank), dtype=jnp.float32) * 0.02
    b = jax.random.normal(kbias, (out_features,), dtype=jnp.float32) * 0.01

    # Case 1: f32 streaming path, tight tolerance (fused-W vs factored is only reassociation).
    x = jax.random.normal(kx, (2, 8, in_features), dtype=jnp.float32)
    out = jax.block_until_ready(
        lora_linear(x, lora_A, lora_B, b, scaling, compute_dtype=jnp.float32))
    ref = _reference(x, lora_A, lora_B, b, scaling)
    assert out.shape == (2, 8, out_features)
    assert jnp.allclose(out, ref, atol=2e-5, rtol=1e-4)

    # Case 2: bf16 streaming, ragged rows (batch*seq = 10 -> single partial block, masked store).
    x2 = jax.random.normal(kx2, (2, 5, in_features), dtype=jnp.float32).astype(jnp.bfloat16)
    out2 = jax.block_until_ready(lora_linear(x2, lora_A, lora_B, b, scaling))
    ref2 = _reference(x2.astype(jnp.float32), lora_A, lora_B, b, scaling)
    assert out2.shape == (2, 5, out_features)
    assert jnp.allclose(out2.astype(jnp.float32), ref2, atol=1e-2, rtol=2e-2)

    # Case 3: bf16, multiple row blocks with a partial tail (M=1000, tm=512 -> 2 blocks).
    x3 = jax.random.normal(kx3, (4, 250, in_features), dtype=jnp.float32).astype(jnp.bfloat16)
    out3 = jax.block_until_ready(lora_linear(x3, lora_A, lora_B, b, scaling, tm=512))
    ref3 = _reference(x3.astype(jnp.float32), lora_A, lora_B, b, scaling)
    assert out3.shape == (4, 250, out_features)
    assert jnp.allclose(out3.astype(jnp.float32), ref3, atol=1e-2, rtol=2e-2)

    print("KERNEL_OK")
</pallas_src>

<mosaic_0001>
module attributes {stable_mosaic.version = 11 : i64} {
  func.func @_lora_kernel(%arg0: i32, %arg1: memref<16x128xf32, #tpu.memory_space<vmem>>, %arg2: memref<128x128xf32, #tpu.memory_space<vmem>>, %arg3: memref<1x128xf32, #tpu.memory_space<vmem>>, %arg4: memref<16x128xf32, #tpu.memory_space<vmem>>) attributes {dimension_semantics = [#tpu.dimension_semantics<parallel>], iteration_bounds = array<i64: 1>, scalar_prefetch = 0 : i64, scratch_operands = 0 : i64, tpu.core_type = #tpu.core_type<tc>, window_params = [{transform_indices = @transform_0, window_bounds = array<i64: 16, 128>}, {pipeline_mode = #tpu.pipeline_mode<synchronous>, transform_indices = @transform_1, window_bounds = array<i64: 128, 128>}, {pipeline_mode = #tpu.pipeline_mode<synchronous>, transform_indices = @transform_2, window_bounds = array<i64: 1, 128>}, {transform_indices = @transform_3, window_bounds = array<i64: 16, 128>}]} {
    %c0 = arith.constant 0 : index
    %c0_0 = arith.constant 0 : index
    %0 = vector.load %arg1[%c0, %c0_0] : memref<16x128xf32, #tpu.memory_space<vmem>>, vector<16x128xf32>
    %c0_1 = arith.constant 0 : index
    %c0_2 = arith.constant 0 : index
    %1 = vector.load %arg2[%c0_1, %c0_2] : memref<128x128xf32, #tpu.memory_space<vmem>>, vector<128x128xf32>
    %cst = arith.constant dense<0.000000e+00> : vector<16x128xf32>
    %2 = tpu.matmul %0, %1, %cst {dimension_numbers = #tpu.dot_dimension_numbers<[1], [0], [0], [1], [0, 0, 1, 1], [], []>} : vector<16x128xf32>, vector<128x128xf32>, vector<16x128xf32> -> vector<16x128xf32>
    %c0_3 = arith.constant 0 : index
    %c0_4 = arith.constant 0 : index
    %3 = vector.load %arg3[%c0_3, %c0_4] : memref<1x128xf32, #tpu.memory_space<vmem>>, vector<1x128xf32>
    %4 = vector.broadcast %3 : vector<1x128xf32> to vector<16x128xf32>
    %5 = arith.addf %2, %4 : vector<16x128xf32>
    %c0_5 = arith.constant 0 : index
    %c0_6 = arith.constant 0 : index
    %6 = vector.load %arg4[%c0_5, %c0_6] : memref<16x128xf32, #tpu.memory_space<vmem>>, vector<16x128xf32>
    tpu.vector_store %arg4[%c0_5, %c0_6], %5 {strides = array<i32>} : memref<16x128xf32, #tpu.memory_space<vmem>>, vector<16x128xf32>,
    return
  }
  func.func @transform_0(%arg0: i32) -> (i32, i32) {
    %c0_i32 = arith.constant 0 : i32
    %c0_i32_0 = arith.constant 0 : i32
    return %arg0, %c0_i32 : i32, i32
  }
  func.func @transform_1(%arg0: i32) -> (i32, i32) {
    %c0_i32 = arith.constant 0 : i32
    %c0_i32_0 = arith.constant 0 : i32
    %c0_i32_1 = arith.constant 0 : i32
    return %c0_i32, %c0_i32_0 : i32, i32
  }
  func.func @transform_2(%arg0: i32) -> (i32, i32) {
    %c0_i32 = arith.constant 0 : i32
    %c0_i32_0 = arith.constant 0 : i32
    %c0_i32_1 = arith.constant 0 : i32
    return %c0_i32, %c0_i32_0 : i32, i32
  }
  func.func @transform_3(%arg0: i32) -> (i32, i32) {
    %c0_i32 = arith.constant 0 : i32
    %c0_i32_0 = arith.constant 0 : i32
    return %arg0, %c0_i32 : i32, i32
  }
}

</mosaic_0001>

<bundles_post_ra>
// kernel: tpu_custom_call.1
= control target key start
LH: loop header
LB: loop body
LE: loop exit
PB: predicated region body
PF: predicated region fallthrough
CT: control target
= control target key end

     0   :  { %8 = vsyncpa [#allocation3], 0  ;;  %s260_s0 = inlined_call_operand.hbm [shape: f32[16,128], index: 0, kind: input, shape index: {}]   ;;  %s261_s1 = inlined_call_operand.hbm [shape: f32[128,128], index: 1, kind: input, shape index: {}]   ;;  %s262_s2 = inlined_call_operand.vmem [shape: f32[1,128], index: 2, kind: input, shape index: {}]   ;;  %s263_s3 = inlined_call_operand.hbm [shape: f32[16,128], index: 3, kind: output, shape index: {}]  }
   0x1   :  { %9 = vsyncpa [#allocation6], 0 }
   0x2   :  { %10 = vsyncpa [#allocation4], 0  ;;  %s15_s14 = sshll.u32 %s260_s0, 4  ;;  %s214_s15 = smov [#allocation2]   ;;  %s16_s14 = int_to_ptr.hbm [resolvable:$true] %s15_s14 }
   0x3   :  { %s17_s16 = sshll.u32 %s214_s15, 4  ;;  %s28_s19 = sshll.u32 %s261_s1, 4  ;;  %s18_s16 = int_to_ptr.vmem [resolvable:$true] %s17_s16  ;;  %s29_s19 = int_to_ptr.hbm [resolvable:$true] %s28_s19 }
   0x4   :  { %s215_s20 = smov 128   ;;  %s216_s21 = smov 8  }
   0x5   :  { %23 = dma.hbm_to_vmem [thread:$0]  %s16_s14, 256, %s18_s16, [#allocation3], %s215_s20, %s215_s20, %s216_s21  }
   0x6   :  { %s217_s22 = smov [#allocation5]  }
   0x7   :  { %s30_s23 = sshll.u32 %s217_s22, 4  ;;  %s31_s23 = int_to_ptr.vmem [resolvable:$true] %s30_s23 }
   0x8   :  { %36 = dma.hbm_to_vmem [thread:$0]  %s29_s19, 2048, %s31_s23, [#allocation6], %s215_s20, %s215_s20, %s216_s21  }
   0x9   :  { %208 = dma.done.wait [#allocation3], 256  }
   0xa   :  { %209 = vsyncadd [#allocation3], 4294967040 }
   0xb   :  { %210 = dma.done.wait [#allocation6], 2048  }
   0xc   :  { %211 = vsyncadd [#allocation6], 4294965248  ;;  %v64_v0 = vld [vmem:[#allocation5 + $0x78] sm:$0xff]  ;;  %v63_v1 = vld [vmem:[#allocation5 + $0x70] sm:$0xff]  ;;  %s218_s24 = smov [#allocation7]   ;;  %s100_s28 = sshll.u32 %s263_s3, 4  ;;  %s101_s28 = int_to_ptr.hbm [resolvable:$true] %s100_s28 }
   0xd   :  { %69 = vmatpush.msra.mxu0 %v64_v0  ;;  %114 = vmatpush.msra.mxu1 %v64_v0  ;;  %v62_v2 = vld [vmem:[#allocation5 + $0x68] sm:$0xff]  ;;  %v61_v3 = vld [vmem:[#allocation5 + $0x60] sm:$0xff]  ;;  %v60_v4 = vld [vmem:[#allocation5 + $0x58] sm:$0xff]  ;;  %s98_s25 = sshll.u32 %s218_s24, 4  ;;  %s99_s25 = int_to_ptr.vmem [resolvable:$true] %s98_s25 }
   0xe   :  { %v59_v5 = vld [vmem:[#allocation5 + $0x50] sm:$0xff]  ;;  %v58_v6 = vld [vmem:[#allocation5 + $0x48] sm:$0xff]  ;;  %v57_v7 = vld [vmem:[#allocation5 + $0x40] sm:$0xff] }
   0xf   :  { %70 = vmatpush.msra.mxu0 %v63_v1  ;;  %115 = vmatpush.msra.mxu1 %v63_v1  ;;  %v56_v8 = vld [vmem:[#allocation5 + $0x38] sm:$0xff]  ;;  %v55_v9 = vld [vmem:[#allocation5 + $0x30] sm:$0xff]  ;;  %v54_v10 = vld [vmem:[#allocation5 + $0x28] sm:$0xff] }
  0x10   :  { %v53_v11 = vld [vmem:[#allocation5 + $0x20] sm:$0xff]  ;;  %v52_v12 = vld [vmem:[#allocation5 + $0x18] sm:$0xff]  ;;  %v51_v13 = vld [vmem:[#allocation5 + $0x10] sm:$0xff] }
  0x11   :  { %71 = vmatpush.msra.mxu0 %v62_v2  ;;  %116 = vmatpush.msra.mxu1 %v62_v2  ;;  %v50_v14 = vld [vmem:[#allocation5 + $0x8] sm:$0xff]  ;;  %v49_v15 = vld [vmem:[#allocation5] sm:$0xff]  ;;  %v47_v16 = vld [vmem:[#allocation2] sm:$0xff] }
  0x12   :  { %v48_v17 = vld [vmem:[#allocation2 + $0x8] sm:$0xff]  ;;  %v135_v18 = vld [vmem:[%s262_s2] ss:$0 sm:$0xff] }
  0x13   :  { %72 = vmatpush.msra.mxu0 %v61_v3  ;;  %117 = vmatpush.msra.mxu1 %v61_v3 }
  0x15   :  { %73 = vmatpush.msra.mxu0 %v60_v4  ;;  %118 = vmatpush.msra.mxu1 %v60_v4 }
  0x17   :  { %74 = vmatpush.msra.mxu0 %v59_v5  ;;  %119 = vmatpush.msra.mxu1 %v59_v5 }
  0x19   :  { %75 = vmatpush.msra.mxu0 %v58_v6  ;;  %120 = vmatpush.msra.mxu1 %v58_v6 }
  0x1b   :  { %76 = vmatpush.msra.mxu0 %v57_v7  ;;  %121 = vmatpush.msra.mxu1 %v57_v7 }
  0x1d   :  { %77 = vmatpush.msra.mxu0 %v56_v8  ;;  %122 = vmatpush.msra.mxu1 %v56_v8 }
  0x1f   :  { %78 = vmatpush.msra.mxu0 %v55_v9  ;;  %123 = vmatpush.msra.mxu1 %v55_v9 }
  0x21   :  { %79 = vmatpush.msra.mxu0 %v54_v10  ;;  %124 = vmatpush.msra.mxu1 %v54_v10 }
  0x23   :  { %80 = vmatpush.msra.mxu0 %v53_v11  ;;  %125 = vmatpush.msra.mxu1 %v53_v11 }
  0x25   :  { %81 = vmatpush.msra.mxu0 %v52_v12  ;;  %126 = vmatpush.msra.mxu1 %v52_v12 }
  0x27   :  { %82 = vmatpush.msra.mxu0 %v51_v13  ;;  %127 = vmatpush.msra.mxu1 %v51_v13 }
  0x29   :  { %83 = vmatpush.msra.mxu0 %v50_v14  ;;  %128 = vmatpush.msra.mxu1 %v50_v14 }
  0x2b   :  { %84 = vmatpush.msra.mxu0 %v49_v15  ;;  %129 = vmatpush.msra.mxu1 %v49_v15 }
  0x2c   :  { %85 = vmatmul.f32.vlgmr.msra.gmra.mxu0 %v47_v16  ;;  %88 = vmatmul.f32.vlgmr.msra.gmra.mxu1 %v48_v17 }
  0xa9   :  { %v86_v19 = vpop.f32.mrf.mxu0  ;;  %v89_v20 = vpop.f32.mrf.mxu1 }
  0xaa   :  { %v87_v21 = vadd.f32 %v135_v18, %v86_v19  ;;  %v90_v22 = vadd.f32 %v135_v18, %v89_v20 }
  0xac   :  { %92 = vst [vmem:[#allocation7] sm:$0xff] %v87_v21 }
  0xad   :  { %93 = vst [vmem:[#allocation7 + $0x8] sm:$0xff] %v90_v22 }
  0xae   :  { %106 = dma.vmem_to_hbm [thread:$0]  %s99_s25, 256, %s101_s28, [#allocation4], %s215_s20, %s215_s20, %s216_s21  }
  0xaf   :  { %212 = dma.done.wait [#allocation4], 256  }
  0xb0   :  { %213 = vsyncadd [#allocation4], 4294967040 }
  0xb1   :  { %111 = vsyncpa [#allocation3], 1 }
  0xb2   :  { %112 = vsyncpa [#allocation6], 1 }
  0xb3   :  { %113 = vsyncpa [#allocation4], 1 }

</bundles_post_ra>
